<compile_context>
chip_gen: v7x
topology: tpu7x:2x2x1
jax: 0.10.0
libtpu: 0.0.40
codegen_flags: <defaults>
</compile_context>

<pallas_src>
import numpy as np
import jax
import jax.numpy as jnp
from jax import lax
from jax.experimental import pallas as pl
from jax.experimental.pallas import tpu as pltpu

# ---- static problem sizes (small, consistent with the forward pass) ----
B, C, H, W = 2, 4, 16, 16          # latent: NCHW
HW = H * W
T, D = 8, 32                       # cond tokens / embedding dim


# ----------------------------- Pallas kernel -------------------------------
def _kernel(w8_ref, x_ref, gain_ref, off_ref, o_ref):
    # w8_ref:   VMEM (B*C, B*C)  block-diagonal channel-mix weight (W_cc^T per batch)
    # x_ref:    VMEM (B*C, HW)   latent, NCHW with spatial flattened onto lanes
    # gain_ref: VMEM (B*C, HW)   sscale[b] * folded CFG per-pixel gain (row-expanded)
    # off_ref:  VMEM (B*C, HW)   folded CFG per-channel/per-pixel offset (batch-tiled)
    # o_ref:    VMEM (B*C, HW)
    base = jnp.dot(w8_ref[...], x_ref[...],
                   preferred_element_type=jnp.float32,
                   precision=lax.Precision.HIGHEST)
    # two full-tile VPU ops + one unmasked full-tile store
    o_ref[...] = base * gain_ref[...] + off_ref[...]


def _cfg_denoiser_pallas_impl(x_nchw, sigma, ctoks, cmasks, utoks, umasks,
                              cond_scale, w_cc, w_dc):
    b, c, h, w_ = x_nchw.shape
    hw = h * w_

    # ---- fold all mask / bias / count / CFG algebra host-side (tiny, static) ----
    def fold_group(toks, masks):
        # bias_e = mean_T(tok_e @ W_dc)  -> (E, C)
        biases = jnp.mean(jnp.einsum('etd,dc->etc', toks, w_dc,
                                     precision=lax.Precision.HIGHEST), axis=1)
        s = jnp.sum(masks, axis=0)                      # (HW,)
        inv = 1.0 / (s + 1.0 / 100000.0)                # epsilon from out_count init
        gain = s * inv                                  # (HW,)
        off = jnp.einsum('ec,ep->cp', biases, masks,
                         precision=lax.Precision.HIGHEST) * inv[None, :]   # (C, HW)
        return gain, off

    gc_, bc_ = fold_group(ctoks, cmasks)
    gu_, bu_ = fold_group(utoks, umasks)
    cfg_gain = gu_ + (gc_ - gu_) * cond_scale           # (HW,)
    cfg_off = bu_ + (bc_ - bu_) * cond_scale            # (C, HW)

    sscale = 1.0 / (sigma.astype(jnp.float32) ** 2 + 1.0)              # (B,)
    gain = sscale[:, None] * cfg_gain[None, :]                          # (B, HW)

    # pre-expand to full (B*C, HW) tiles: every kernel VPU op is sublane-dense
    gain_tile = jnp.repeat(gain, c, axis=0).astype(jnp.float32)         # (B*C, HW)
    off_tile = jnp.tile(cfg_off, (b, 1)).astype(jnp.float32)            # (B*C, HW)

    # block-diagonal weight: W8[b*C + c, b*C + k] = W_cc[k, c]
    w8 = jnp.kron(jnp.eye(b, dtype=jnp.float32),
                  jnp.asarray(w_cc, jnp.float32).T)                     # (B*C, B*C)

    x_flat = x_nchw.reshape(b * c, hw).astype(jnp.float32)              # (B*C, HW)

    out = pl.pallas_call(
        _kernel,
        out_shape=jax.ShapeDtypeStruct((b * c, hw), jnp.float32),
        in_specs=[
            pl.BlockSpec(memory_space=pltpu.MemorySpace.VMEM),   # w8    (B*C, B*C)
            pl.BlockSpec(memory_space=pltpu.MemorySpace.VMEM),   # x     (B*C, HW)
            pl.BlockSpec(memory_space=pltpu.MemorySpace.VMEM),   # gain  (B*C, HW)
            pl.BlockSpec(memory_space=pltpu.MemorySpace.VMEM),   # off   (B*C, HW)
        ],
        out_specs=pl.BlockSpec(memory_space=pltpu.MemorySpace.VMEM),
        input_output_aliases={1: 0},   # write result back over x_flat's HBM buffer
    )(w8, x_flat, gain_tile, off_tile)

    return out.reshape(b, c, h, w_)


cfg_denoiser_pallas = jax.jit(_cfg_denoiser_pallas_impl)


# ------------------- host-side glue: masks / gating (static per call) -------------------
def build_feather_mask(Himg, Wimg, area, strength):
    """Replicates the reference slicing (including the area-offset indexing quirk;
    out-of-range slices clamp to empty in numpy exactly like in PyTorch)."""
    h, w, yo, xo = int(area[0]), int(area[1]), int(area[2]), int(area[3])
    mult = np.ones((h, w), dtype=np.float32) * strength
    rr = 8
    if yo != 0:
        for t in range(rr):
            mult[yo + t:yo + 1 + t, :] *= 1.0 / rr * (t + 1)
    if h + yo < Himg:
        for t in range(rr):
            mult[h + yo - 1 - t:h + yo - t, :] *= 1.0 / rr * (t + 1)
    if xo != 0:
        for t in range(rr):
            mult[:, xo + t:xo + 1 + t] *= 1.0 / rr * (t + 1)
    if w + xo < Wimg:
        for t in range(rr):
            mult[:, w + xo - 1 - t:w + xo - t] *= 1.0 / rr * (t + 1)
    full = np.zeros((Himg, Wimg), dtype=np.float32)
    full[yo:yo + h, xo:xo + w] = mult
    return full


def prepare_group(entries, x_shape, sigma0):
    """Per-entry gated feather masks (E, HW) and stacked tokens (E, T, D)."""
    _, c, Himg, Wimg = x_shape
    hw = Himg * Wimg
    toks, masks = [], []
    for tokens, opts in entries:
        area = (Himg, Wimg, 0, 0)
        strength, min_sigma, max_sigma = 1.0, 0.0, 999.0
        if 'area' in opts:
            area = opts['area']
        if 'strength' in opts:
            strength = opts['strength']
        if 'min_sigma' in opts:
            min_sigma = opts['min_sigma']
        if 'max_sigma' in opts:
            max_sigma = opts['max_sigma']
        # `continue` in the reference == zero contribution to out_cond AND out_count
        # (gating uses sigma[0] for all batch elements, exactly like the reference)
        gate = 0.0 if (sigma0 < min_sigma or sigma0 > max_sigma) else 1.0
        m = build_feather_mask(Himg, Wimg, area, strength) * gate
        toks.append(np.asarray(tokens, dtype=np.float32))
        masks.append(m.reshape(hw))
    return jnp.asarray(np.stack(toks)), jnp.asarray(np.stack(masks))


# ------------------------------ pure-JAX reference (unfused) ------------------------------
def reference(x_nchw, sigma, ctoks, cmasks, utoks, umasks, cond_scale, w_cc, w_dc):
    b, c, h, w_ = x_nchw.shape
    hw = h * w_
    xf = x_nchw.reshape(b, c, hw).astype(jnp.float32)
    sscale = 1.0 / (sigma.astype(jnp.float32) ** 2 + 1.0)
    base = jnp.einsum('kc,bkp->bcp', w_cc, xf,
                      precision=lax.Precision.HIGHEST) * sscale[:, None, None]

    def grp(toks, masks):
        out = jnp.zeros_like(base)
        cnt = jnp.full_like(base, 1.0 / 100000.0)
        for e in range(toks.shape[0]):
            bias = jnp.mean(jnp.dot(toks[e], w_dc, precision=lax.Precision.HIGHEST),
                            axis=0)                                  # (C,)
            m = masks[e][None, None, :]                              # (1, 1, HW)
            out = out + (base + bias[None, :, None]) * m
            cnt = cnt + m
        return out / cnt

    cond_r = grp(ctoks, cmasks)
    unc_r = grp(utoks, umasks)
    res = unc_r + (cond_r - unc_r) * cond_scale
    return res.reshape(b, c, h, w_)


# ------------------------------------ main ------------------------------------
if __name__ == "__main__":
    key = jax.random.PRNGKey(0)
    kx, kc0, kc1, ku0, kw, kwc, ks = jax.random.split(key, 7)

    x = jax.random.normal(kx, (B, C, H, W), dtype=jnp.float32)
    sigma = jnp.abs(jax.random.normal(ks, (B,), dtype=jnp.float32)) + 0.5
    cond_scale = 7.5

    # cond / uncond entry lists: (tokens, options-dict), as in the reference forward
    cond = [
        (jax.random.normal(kc0, (T, D), dtype=jnp.float32), {}),
        (jax.random.normal(kc1, (T, D), dtype=jnp.float32),
         {'area': (8, 8, 4, 4), 'strength': 0.7, 'min_sigma': 0.0, 'max_sigma': 999.0}),
    ]
    uncond = [(jax.random.normal(ku0, (T, D), dtype=jnp.float32), {})]

    # deterministic synthetic inner-model parameters
    w_cc = (jax.random.normal(kw, (C, C), dtype=jnp.float32) * 0.2
            + jnp.eye(C, dtype=jnp.float32))
    w_dc = jax.random.normal(kwc, (D, C), dtype=jnp.float32) * 0.1

    sigma0 = float(np.asarray(sigma)[0])
    ctoks, cmasks = prepare_group(cond, x.shape, sigma0)
    utoks, umasks = prepare_group(uncond, x.shape, sigma0)

    out = cfg_denoiser_pallas(x, sigma, ctoks, cmasks, utoks, umasks,
                              cond_scale, w_cc, w_dc)
    out = jax.block_until_ready(out)

    ref = reference(x, sigma, ctoks, cmasks, utoks, umasks, cond_scale, w_cc, w_dc)
    assert out.shape == (B, C, H, W)
    assert np.allclose(np.asarray(out), np.asarray(ref), atol=2e-3, rtol=2e-3)

    print("KERNEL_OK")
</pallas_src>

<mosaic_0001>
module attributes {stable_mosaic.version = 11 : i64} {
  func.func @_kernel(%arg0: memref<8x8xf32, #tpu.memory_space<vmem>>, %arg1: memref<8x256xf32, #tpu.memory_space<vmem>>, %arg2: memref<8x256xf32, #tpu.memory_space<vmem>>, %arg3: memref<8x256xf32, #tpu.memory_space<vmem>>, %arg4: memref<8x256xf32, #tpu.memory_space<vmem>>) attributes {dimension_semantics = [], scalar_prefetch = 0 : i64, scratch_operands = 0 : i64, tpu.core_type = #tpu.core_type<tc>} {
    %c0 = arith.constant 0 : index
    %c0_0 = arith.constant 0 : index
    %0 = vector.load %arg0[%c0, %c0_0] : memref<8x8xf32, #tpu.memory_space<vmem>>, vector<8x8xf32>
    %c0_1 = arith.constant 0 : index
    %c0_2 = arith.constant 0 : index
    %1 = vector.load %arg1[%c0_1, %c0_2] : memref<8x256xf32, #tpu.memory_space<vmem>>, vector<8x256xf32>
    %cst = arith.constant dense<0.000000e+00> : vector<8x256xf32>
    %2 = tpu.matmul %0, %1, %cst {dimension_numbers = #tpu.dot_dimension_numbers<[1], [0], [0], [1], [0, 0, 1, 1], [], []>, precision = #tpu.contract_precision<fp32>} : vector<8x8xf32>, vector<8x256xf32>, vector<8x256xf32> -> vector<8x256xf32>
    %c0_3 = arith.constant 0 : index
    %c0_4 = arith.constant 0 : index
    %3 = vector.load %arg2[%c0_3, %c0_4] : memref<8x256xf32, #tpu.memory_space<vmem>>, vector<8x256xf32>
    %4 = arith.mulf %2, %3 : vector<8x256xf32>
    %c0_5 = arith.constant 0 : index
    %c0_6 = arith.constant 0 : index
    %5 = vector.load %arg3[%c0_5, %c0_6] : memref<8x256xf32, #tpu.memory_space<vmem>>, vector<8x256xf32>
    %6 = arith.addf %4, %5 : vector<8x256xf32>
    %c0_7 = arith.constant 0 : index
    %c0_8 = arith.constant 0 : index
    %7 = vector.load %arg4[%c0_7, %c0_8] : memref<8x256xf32, #tpu.memory_space<vmem>>, vector<8x256xf32>
    tpu.vector_store %arg4[%c0_7, %c0_8], %6 {strides = array<i32>} : memref<8x256xf32, #tpu.memory_space<vmem>>, vector<8x256xf32>,
    return
  }
}

</mosaic_0001>

<bundles_post_ra>
// kernel: tile.9
= control target key start
LH: loop header
LB: loop body
LE: loop exit
PB: predicated region body
PF: predicated region fallthrough
CT: control target
= control target key end

     0   :  { %s76_s0 = inlined_call_operand.vmem [shape: f32[2,4,256], index: 0, kind: input, shape index: {}]   ;;  %s77_s1 = inlined_call_operand.vmem [shape: f32[8,256], index: 1, kind: output, shape index: {}]  }
   0x1   :  { %v36_v0 = vld [vmem:[%s76_s0 + $0xc] sm:$0xf]  ;;  %v37_v1 = vld [vmem:[%s76_s0 + $0x8] sm:$0xf]  ;;  %v38_v2 = vld [vmem:[%s76_s0 + $0x4] sm:$0xf] }
   0x2   :  { %8 = vst [vmem:[#allocation0 + $0x18] sm:$0xf] %v36_v0  ;;  %13 = vst [vmem:[#allocation0 + $0x10] sm:$0xf] %v37_v1  ;;  %v18_v3 = vld [vmem:[%s76_s0] sm:$0xf] }
   0x3   :  { %17 = vst [vmem:[#allocation0 + $0x8] sm:$0xf] %v38_v2  ;;  %19 = vst [vmem:[#allocation0] sm:$0xf] %v18_v3 }
   0x9   :  { %v27_v5 = vld [vmem:[#allocation0 + $0x10] sm:$0xf]   ;;  %v31_v6 = vld [vmem:[#allocation0 + $0x18] sm:$0xf]  }
   0xa   :  { %v23_v4 = vld [vmem:[#allocation0 + $0x8] sm:$0xf]   ;;  %v20_v7 = vld [vmem:[#allocation0] sm:$0xf]   ;;  %40 = vst [vmem:[%s77_s1 + $0x4] sm:$0xf] %v27_v5  }
   0xb   :  { %39 = vst [vmem:[%s77_s1 + $0x8] sm:$0xf] %v23_v4   ;;  %41 = vst [vmem:[%s77_s1 + $0xc] sm:$0xf] %v31_v6  }
   0xc   :  { %21 = vst [vmem:[%s77_s1] sm:$0xf] %v20_v7  }

// kernel: _cfg_denoiser_pallas_impl.1
= control target key start
LH: loop header
LB: loop body
LE: loop exit
PB: predicated region body
PF: predicated region fallthrough
CT: control target
= control target key end

     0   :  { %vm20_vm0 = vcmask 64512   ;;  %v514_v2 = vmov 0.0   ;;  %s567_s1 = inlined_call_operand.vmem [shape: f32[8,256], index: 1, kind: input, shape index: {}, may-alias: {1,4}]   ;;  %s568_s0 = inlined_call_operand.vmem [shape: f32[8,8], index: 0, kind: input, shape index: {}]   ;;  %s569_s2 = inlined_call_operand.vmem [shape: f32[8,256], index: 2, kind: input, shape index: {}]   ;;  %s570_s3 = inlined_call_operand.vmem [shape: f32[8,256], index: 3, kind: input, shape index: {}]   ;;  %s571_s4 = inlined_call_operand.vmem [shape: f32[8,256], index: 4, kind: output, shape index: {}, may-alias: {1,4}]  }
   0x1   :  { %v19_v0 = vld [vmem:[%s567_s1 + $0x8] sm:$0xff]  ;;  %v18_v1 = vld [vmem:[%s567_s1] sm:$0xff]  ;;  %327 = vmatprep.mubr.f32.mxu0 %v514_v2  ;;  %90 = vmatprep.mubr.f32.mxu1 %v514_v2 }
   0x2   :  { %v17_v3 = vld [vmem:[%s568_s0] sm:$0xff]  ;;  %v24_v4 = vand.u32 4294901760, %v19_v0  ;;  %v26_v5 = vand.u32 4294901760, %v18_v1  ;;  %v490_v26 = vld [vmem:[%s569_s2 + $0x8] sm:$0xff] }
   0x3   :  { %v22_v6 = vsel %vm20_vm0, %v17_v3, 0  ;;  %v489_v23 = vld [vmem:[%s569_s2] sm:$0xff]  ;;  %v494_v30 = vld [vmem:[%s570_s3 + $0x8] sm:$0xff] }
   0x4   :  { %v91_v7 = vand.u32 4294901760, %v22_v6  ;;  %262 = vmatprep.subr.mxu0 %v24_v4  ;;  %v109_v8 = vsub.f32 %v18_v1, %v26_v5  ;;  %25 = vmatprep.subr.mxu1 %v24_v4  ;;  %v103_v9 = vsub.f32 %v19_v0, %v24_v4  ;;  %v493_v27 = vld [vmem:[%s570_s3] sm:$0xff] }
   0x5   :  { %264 = vmatpush1.msra.mxu0 %v26_v5  ;;  %27 = vmatpush1.msra.mxu1 %v26_v5 }
   0x6   :  { %v92_v10 = vsub.f32 %v22_v6, %v91_v7  ;;  %v104_v11 = vand.u32 4294901760, %v103_v9  ;;  %v110_v12 = vand.u32 4294901760, %v109_v8 }
   0x8   :  { %v93_v13 = vand.u32 4294901760, %v92_v10  ;;  %v105_v14 = vsub.f32 %v103_v9, %v104_v11  ;;  %340 = vmatprep.subr.mxu0 %v104_v11  ;;  %v111_v15 = vsub.f32 %v109_v8, %v110_v12 }
   0xa   :  { %331 = vmatmul.mubr.f32.vlgmr.msra.gmra.mrb[0].mxu0 %v93_v13  ;;  %v94_v16 = vsub.f32 %v92_v10, %v93_v13  ;;  %v106_v17 = vand.u32 4294901760, %v105_v14  ;;  %v112_v18 = vand.u32 4294901760, %v111_v15 }
   0xb   :  { %344 = vmatpush1.msra.mxu0 %v110_v12  ;;  %407 = vmatprep.mubr.f32.mxu0 %v514_v2 }
   0xc   :  { %v95_v19 = vand.u32 4294901760, %v94_v16  ;;  %416 = vmatprep.subr.mxu0 %v24_v4  ;;  %107 = vmatprep.subr.mxu1 %v106_v17 }
   0xe   :  { %96 = vmatmul.mubr.f32.vlgmr.msra.gmra.mrb[0].mxu1 %v95_v19 }
   0xf   :  { %113 = vmatpush1.msra.mxu1 %v112_v18  ;;  %176 = vmatprep.mubr.f32.mxu1 %v514_v2 }
  0x10   :  { %186 = vmatprep.subr.mxu1 %v103_v9 }
  0x12   :  { %409 = vmatmul.mubr.f32.vlgmr.msra.gmra.mrb[0].mxu0 %v91_v7 }
  0x13   :  { %418 = vmatpush1.msra.mxu0 %v26_v5  ;;  %481 = vmatprep.mubr.f32.mxu0 %v514_v2 }
  0x16   :  { %178 = vmatmul.mubr.f32.vlgmr.msra.gmra.mrb[0].mxu1 %v91_v7 }
  0x17   :  { %189 = vmatpush1.msra.mxu1 %v109_v8  ;;  %252 = vmatprep.mubr.f32.mxu1 %v514_v2 }
  0x1a   :  { %483 = vmatmul.mubr.f32.vlgmr.msra.gmra.mrb[0].mxu0 %v91_v7 }
  0x1e   :  { %255 = vmatmul.mubr.f32.vlgmr.msra.gmra.mrb[0].mxu1 %v92_v10 }
  0xed   :  { %v484_v20 = vpop.f32.mrb[0].mxu0 }
  0xee   :  { %v486_v21 = vpop.f32.mrb[1].mxu0 }
  0xf1   :  { %v256_v22 = vpop.f32.mrb[0].mxu1 }
  0xf2   :  { %v503_v24 = vadd.f32 %v484_v20, %v256_v22  ;;  %v258_v25 = vpop.f32.mrb[1].mxu1 }
  0xf3   :  { %v504_v28 = vadd.f32 %v486_v21, %v258_v25 }
  0xf4   :  { %v491_v29 = vmul.f32 %v503_v24, %v489_v23 }
  0xf5   :  { %v492_v31 = vmul.f32 %v504_v28, %v490_v26 }
  0xf6   :  { %v495_v32 = vadd.f32 %v493_v27, %v491_v29 }
  0xf7   :  { %v496_v33 = vadd.f32 %v494_v30, %v492_v31 }
  0xf8   :  { %497 = vst [vmem:[%s571_s4] sm:$0xff] %v495_v32 }
  0xf9   :  { %498 = vst [vmem:[%s571_s4 + $0x8] sm:$0xff] %v496_v33 }

</bundles_post_ra>
